<compile_context>
chip_gen: v7x
topology: tpu7x:2x2x1
jax: 0.10.0
libtpu: 0.0.40
codegen_flags: <defaults>
</compile_context>

<pallas_src>
import jax
import jax.numpy as jnp
from jax.experimental import pallas as pl
from jax.experimental.pallas import tpu as pltpu


def make_divisible(v, divisor=8, min_value=None):
    min_value = min_value or divisor
    new_v = max(min_value, int(v + divisor / 2) // divisor * divisor)
    if new_v < 0.9 * v:
        new_v += divisor
    return new_v


# ----------------------------------------------------------------------------
# Kernel
# ----------------------------------------------------------------------------
def _se_kernel(x_ref, w1_ref, b1_ref, w2_ref, b2_ref, o_ref):
    # x_ref: (Nb, C, HW)   -- channels on sublanes, HW lane-dense when HW%128==0
    # w1_ref: (C, Cr)  b1_ref: (1, Cr)   w2_ref: (Cr, C)  b2_ref: (1, C)
    x = x_ref[...]
    hw = x.shape[-1]

    # AdaptiveAvgPool2d(1): lane-axis (XLU) reduce with f32 accumulation,
    # without materializing a full-block f32 copy (matters for bf16 inputs).
    mean = jnp.sum(x, axis=-1, dtype=jnp.float32) * (1.0 / hw)      # (Nb, C)

    # conv_reduce (1x1 conv == matmul) + bias, ReLU.  Tiny MXU pass, hidden
    # under the block DMA -- deliberately NOT padded to MXU-friendly shapes.
    h = jnp.dot(mean, w1_ref[...], preferred_element_type=jnp.float32) + b1_ref[...]
    h = jnp.maximum(h, 0.0)                                          # (Nb, Cr)

    # conv_expand + bias, Sigmoid gate (EUP); gate math stays in f32 (v5e-safe).
    g = jnp.dot(h, w2_ref[...], preferred_element_type=jnp.float32) + b2_ref[...]
    g = jax.nn.sigmoid(g)                                            # (Nb, C)

    # Broadcast the (Nb, C, 1) gate across the HW lanes and store.
    o_ref[...] = (x * g[:, :, None].astype(x.dtype)).astype(o_ref.dtype)


# ----------------------------------------------------------------------------
# Sizing helpers
# ----------------------------------------------------------------------------
def _tpu_topology():
    """(vmem_capacity_bytes, num_tensorcores) with conservative fallbacks."""
    vmem_cap = 64 << 20   # assume the tightest (v7x) ceiling if query fails
    num_tc = 1
    try:
        info = pltpu.get_tpu_info()
        vmem_cap = int(getattr(info, "vmem_capacity_bytes", vmem_cap))
        for name in ("num_cores", "core_count", "num_tensorcores",
                     "tensorcores_per_chip"):
            v = getattr(info, name, None)
            if v:
                num_tc = int(v)
                break
    except Exception:
        pass
    return vmem_cap, num_tc


def _pick_batch_block(N, per_sample_bytes, target_block_bytes, max_block_bytes,
                      num_tc):
    """Samples per grid step: as big as the VMEM budget allows, divides N,
    and (only on 2-TC chips) keeps >= 2 steps, preferring an even count."""
    budget = max(per_sample_bytes, min(target_block_bytes, max_block_bytes))
    nb = max(1, min(N, budget // max(per_sample_bytes, 1)))
    if num_tc >= 2 and N >= 2:
        nb = max(1, min(nb, N // 2))          # both TensorCores get work
    while N % nb:                              # no ragged tail blocks
        nb -= 1
    if num_tc >= 2 and N >= 2 and (N // nb) % 2 == 1:
        # Prefer an even number of grid steps (balanced 2-TC split) if it can
        # be had without shrinking the block below half its size.
        for cand in range(nb, max(nb // 2, 1) - 1, -1):
            if N % cand == 0 and (N // cand) % 2 == 0:
                nb = cand
                break
    return nb


# ----------------------------------------------------------------------------
# Wrapper
# ----------------------------------------------------------------------------
def prepare_se_params(w_reduce, b_reduce, w_expand, b_expand):
    """One-time weight prep (hoisted out of the hot path).
       w_reduce: (Cr, C) 1x1-conv weight, b_reduce: (Cr,)
       w_expand: (C, Cr),                 b_expand: (C,)"""
    w1 = jnp.asarray(w_reduce, jnp.float32).T                # (C, Cr)
    b1 = jnp.asarray(b_reduce, jnp.float32).reshape(1, -1)   # (1, Cr)
    w2 = jnp.asarray(w_expand, jnp.float32).T                # (Cr, C)
    b2 = jnp.asarray(b_expand, jnp.float32).reshape(1, -1)   # (1, C)
    return w1, b1, w2, b2


def squeeze_excite_pallas(x_nchw, params, *, target_block_bytes=8 << 20,
                          alias_input=False):
    """x_nchw: (N, C, H, W);  params = prepare_se_params(...)."""
    w1, b1, w2, b2 = params
    N, C, H, W = x_nchw.shape
    Cr = w1.shape[1]
    HW = H * W

    # NCHW -> (N, C, HW): contiguous merge of trailing dims, no HBM traffic.
    x = x_nchw.reshape(N, C, HW)
    # TODO(synk): when HW % 128 != 0 (7x7 / 14x14 SE stages) the full-extent
    # (C, HW) blocks are correct but stores are masked; a channels-on-lanes
    # (N, HW, C) relayout / lane-packing path would keep stores unmasked.

    vmem_cap, num_tc = _tpu_topology()
    usable_vmem = min(vmem_cap, 64 << 20)        # size against the v7x ceiling
    weight_bytes = 4 * (w1.size + b1.size + w2.size + b2.size)
    headroom = 2 << 20
    data_budget = max(usable_vmem - 2 * weight_bytes - headroom, 4 << 20)
    max_block_bytes = data_budget // 4           # 2x double-buffered in + out

    per_sample_bytes = C * HW * x.dtype.itemsize
    nb = _pick_batch_block(N, per_sample_bytes, target_block_bytes,
                           max_block_bytes, num_tc)
    grid = N // nb

    block_bytes = nb * per_sample_bytes
    needed = 4 * block_bytes + 2 * weight_bytes + headroom
    vmem_limit = int(min(max(needed, 16 << 20), usable_vmem))
    # TODO(synk): if a single sample alone blows the budget (nb == 1 and
    # needed > usable_vmem, e.g. C*HW*4B >~ 12 MiB on v7x), drop the x/out
    # specs to single-buffering (pl.Buffered(1)) or use a two-pass path.

    extra = {"input_output_aliases": {0: 0}} if alias_input else {}

    out = pl.pallas_call(
        _se_kernel,
        out_shape=jax.ShapeDtypeStruct((N, C, HW), x.dtype),
        grid_spec=pltpu.PrefetchScalarGridSpec(
            num_scalar_prefetch=0,
            grid=(grid,),
            in_specs=[
                pl.BlockSpec((nb, C, HW), lambda n: (n, 0, 0)),
                pl.BlockSpec((C, Cr), lambda n: (0, 0)),
                pl.BlockSpec((1, Cr), lambda n: (0, 0)),
                pl.BlockSpec((Cr, C), lambda n: (0, 0)),
                pl.BlockSpec((1, C), lambda n: (0, 0)),
            ],
            out_specs=pl.BlockSpec((nb, C, HW), lambda n: (n, 0, 0)),
        ),
        compiler_params=pltpu.CompilerParams(
            dimension_semantics=("parallel",),
            vmem_limit_bytes=vmem_limit),
        **extra,
    )(x, w1, b1, w2, b2)

    # (N, C, HW) -> NCHW: free reshape.
    return out.reshape(N, C, H, W)


# ----------------------------------------------------------------------------
# Pure-JAX reference (PyTorch SE semantics)
# ----------------------------------------------------------------------------
def _reference(x_nchw, w_reduce, b_reduce, w_expand, b_expand):
    x_se = jnp.mean(x_nchw, axis=(2, 3), keepdims=True)                 # (N,C,1,1)
    x_se = jnp.einsum('nchw,rc->nrhw', x_se, w_reduce) + b_reduce[None, :, None, None]
    x_se = jnp.maximum(x_se, 0.0)
    x_se = jnp.einsum('nrhw,cr->nchw', x_se, w_expand) + b_expand[None, :, None, None]
    return x_nchw * jax.nn.sigmoid(x_se)


if __name__ == "__main__":
    # module config: in_chs=32, se_ratio=0.25, divisor=1 -> reduced_chs=8
    in_chs = 32
    reduced_chs = make_divisible(in_chs * 0.25, divisor=1)   # = 8
    N, H, W = 2, 16, 16

    key = jax.random.PRNGKey(0)
    k_x, k_w1, k_b1, k_w2, k_b2 = jax.random.split(key, 5)

    x = jax.random.normal(k_x, (N, in_chs, H, W), dtype=jnp.float32)
    # conv_reduce: Conv2d(in_chs, reduced_chs, 1, bias=True) -> weight (Cr, C)
    w_reduce = jax.random.normal(k_w1, (reduced_chs, in_chs), dtype=jnp.float32) * 0.1
    b_reduce = jax.random.normal(k_b1, (reduced_chs,), dtype=jnp.float32) * 0.1
    # conv_expand: Conv2d(reduced_chs, in_chs, 1, bias=True) -> weight (C, Cr)
    w_expand = jax.random.normal(k_w2, (in_chs, reduced_chs), dtype=jnp.float32) * 0.1
    b_expand = jax.random.normal(k_b2, (in_chs,), dtype=jnp.float32) * 0.1

    params = prepare_se_params(w_reduce, b_reduce, w_expand, b_expand)
    se = jax.jit(squeeze_excite_pallas)

    # 1) f32, lane-dense spatial (16x16 = 256 lanes).
    out = jax.block_until_ready(se(x, params))
    ref = _reference(x, w_reduce, b_reduce, w_expand, b_expand)
    assert out.shape == x.shape
    assert jnp.allclose(out, ref, atol=1e-5, rtol=1e-5), "f32 mismatch vs reference"

    # 2) bf16 activations (mixed-precision gate cast), looser tolerance.
    x_bf = x.astype(jnp.bfloat16)
    out_bf = jax.block_until_ready(se(x_bf, params)).astype(jnp.float32)
    ref_bf = _reference(x_bf.astype(jnp.float32), w_reduce, b_reduce, w_expand, b_expand)
    assert jnp.allclose(out_bf, ref_bf, atol=5e-2, rtol=5e-2), "bf16 mismatch vs reference"

    # 3) f32, lane-sparse spatial (7x7 = 49 lanes): full-extent (C, HW) blocks
    #    keep it correct (masked stores; see TODO in the wrapper).
    x7 = jax.random.normal(k_x, (N, in_chs, 7, 7), dtype=jnp.float32)
    out7 = jax.block_until_ready(se(x7, params))
    ref7 = _reference(x7, w_reduce, b_reduce, w_expand, b_expand)
    assert jnp.allclose(out7, ref7, atol=1e-5, rtol=1e-5), "7x7 mismatch vs reference"

    print("KERNEL_OK")
</pallas_src>

<mosaic_0001>
module attributes {stable_mosaic.version = 11 : i64} {
  func.func @_se_kernel(%arg0: i32, %arg1: memref<2x32x256xf32, #tpu.memory_space<vmem>>, %arg2: memref<32x8xf32, #tpu.memory_space<vmem>>, %arg3: memref<1x8xf32, #tpu.memory_space<vmem>>, %arg4: memref<8x32xf32, #tpu.memory_space<vmem>>, %arg5: memref<1x32xf32, #tpu.memory_space<vmem>>, %arg6: memref<2x32x256xf32, #tpu.memory_space<vmem>>) attributes {dimension_semantics = [#tpu.dimension_semantics<parallel>], iteration_bounds = array<i64: 1>, scalar_prefetch = 0 : i64, scratch_operands = 0 : i64, tpu.core_type = #tpu.core_type<tc>, window_params = [{transform_indices = @transform_0, window_bounds = array<i64: 2, 32, 256>}, {pipeline_mode = #tpu.pipeline_mode<synchronous>, transform_indices = @transform_1, window_bounds = array<i64: 32, 8>}, {pipeline_mode = #tpu.pipeline_mode<synchronous>, transform_indices = @transform_2, window_bounds = array<i64: 1, 8>}, {pipeline_mode = #tpu.pipeline_mode<synchronous>, transform_indices = @transform_3, window_bounds = array<i64: 8, 32>}, {pipeline_mode = #tpu.pipeline_mode<synchronous>, transform_indices = @transform_4, window_bounds = array<i64: 1, 32>}, {transform_indices = @transform_5, window_bounds = array<i64: 2, 32, 256>}]} {
    %c0 = arith.constant 0 : index
    %c0_0 = arith.constant 0 : index
    %c0_1 = arith.constant 0 : index
    %0 = vector.load %arg1[%c0, %c0_0, %c0_1] : memref<2x32x256xf32, #tpu.memory_space<vmem>>, vector<2x32x256xf32>
    %cst = arith.constant dense<0.000000e+00> : vector<2x32xf32>
    %1 = vector.multi_reduction <add>, %0, %cst [2] : vector<2x32x256xf32> to vector<2x32xf32>
    %cst_2 = arith.constant 3.906250e-03 : f32
    %2 = vector.broadcast %cst_2 : f32 to vector<2x32xf32>
    %3 = arith.mulf %1, %2 : vector<2x32xf32>
    %c0_3 = arith.constant 0 : index
    %c0_4 = arith.constant 0 : index
    %4 = vector.load %arg2[%c0_3, %c0_4] : memref<32x8xf32, #tpu.memory_space<vmem>>, vector<32x8xf32>
    %cst_5 = arith.constant dense<0.000000e+00> : vector<2x8xf32>
    %5 = tpu.matmul %3, %4, %cst_5 {dimension_numbers = #tpu.dot_dimension_numbers<[1], [0], [0], [1], [0, 0, 1, 1], [], []>} : vector<2x32xf32>, vector<32x8xf32>, vector<2x8xf32> -> vector<2x8xf32>
    %c0_6 = arith.constant 0 : index
    %c0_7 = arith.constant 0 : index
    %6 = vector.load %arg3[%c0_6, %c0_7] : memref<1x8xf32, #tpu.memory_space<vmem>>, vector<1x8xf32>
    %7 = vector.broadcast %6 : vector<1x8xf32> to vector<2x8xf32>
    %8 = arith.addf %5, %7 : vector<2x8xf32>
    %cst_8 = arith.constant 0.000000e+00 : f32
    %9 = vector.broadcast %cst_8 : f32 to vector<2x8xf32>
    %10 = arith.maximumf %8, %9 : vector<2x8xf32>
    %c0_9 = arith.constant 0 : index
    %c0_10 = arith.constant 0 : index
    %11 = vector.load %arg4[%c0_9, %c0_10] : memref<8x32xf32, #tpu.memory_space<vmem>>, vector<8x32xf32>
    %cst_11 = arith.constant dense<0.000000e+00> : vector<2x32xf32>
    %12 = tpu.matmul %10, %11, %cst_11 {dimension_numbers = #tpu.dot_dimension_numbers<[1], [0], [0], [1], [0, 0, 1, 1], [], []>} : vector<2x8xf32>, vector<8x32xf32>, vector<2x32xf32> -> vector<2x32xf32>
    %c0_12 = arith.constant 0 : index
    %c0_13 = arith.constant 0 : index
    %13 = vector.load %arg5[%c0_12, %c0_13] : memref<1x32xf32, #tpu.memory_space<vmem>>, vector<1x32xf32>
    %14 = vector.broadcast %13 : vector<1x32xf32> to vector<2x32xf32>
    %15 = arith.addf %12, %14 : vector<2x32xf32>
    %16 = arith.negf %15 : vector<2x32xf32>
    %17 = math.exp %16 : vector<2x32xf32>
    %cst_14 = arith.constant 1.000000e+00 : f32
    %18 = vector.broadcast %cst_14 : f32 to vector<2x32xf32>
    %19 = arith.addf %18, %17 : vector<2x32xf32>
    %20 = arith.divf %18, %19 : vector<2x32xf32>
    %21 = vector.shape_cast %20 : vector<2x32xf32> to vector<2x32x1xf32>
    %22 = vector.broadcast %21 : vector<2x32x1xf32> to vector<2x32x256xf32>
    %23 = arith.mulf %0, %22 : vector<2x32x256xf32>
    %c0_15 = arith.constant 0 : index
    %c0_16 = arith.constant 0 : index
    %c0_17 = arith.constant 0 : index
    %24 = vector.load %arg6[%c0_15, %c0_16, %c0_17] : memref<2x32x256xf32, #tpu.memory_space<vmem>>, vector<2x32x256xf32>
    tpu.vector_store %arg6[%c0_15, %c0_16, %c0_17], %23 {strides = array<i32>} : memref<2x32x256xf32, #tpu.memory_space<vmem>>, vector<2x32x256xf32>,
    return
  }
  func.func @transform_0(%arg0: i32) -> (i32, i32, i32) {
    %c0_i32 = arith.constant 0 : i32
    %c0_i32_0 = arith.constant 0 : i32
    %c0_i32_1 = arith.constant 0 : i32
    return %arg0, %c0_i32, %c0_i32_0 : i32, i32, i32
  }
  func.func @transform_1(%arg0: i32) -> (i32, i32) {
    %c0_i32 = arith.constant 0 : i32
    %c0_i32_0 = arith.constant 0 : i32
    %c0_i32_1 = arith.constant 0 : i32
    return %c0_i32, %c0_i32_0 : i32, i32
  }
  func.func @transform_2(%arg0: i32) -> (i32, i32) {
    %c0_i32 = arith.constant 0 : i32
    %c0_i32_0 = arith.constant 0 : i32
    %c0_i32_1 = arith.constant 0 : i32
    return %c0_i32, %c0_i32_0 : i32, i32
  }
  func.func @transform_3(%arg0: i32) -> (i32, i32) {
    %c0_i32 = arith.constant 0 : i32
    %c0_i32_0 = arith.constant 0 : i32
    %c0_i32_1 = arith.constant 0 : i32
    return %c0_i32, %c0_i32_0 : i32, i32
  }
  func.func @transform_4(%arg0: i32) -> (i32, i32) {
    %c0_i32 = arith.constant 0 : i32
    %c0_i32_0 = arith.constant 0 : i32
    %c0_i32_1 = arith.constant 0 : i32
    return %c0_i32, %c0_i32_0 : i32, i32
  }
  func.func @transform_5(%arg0: i32) -> (i32, i32, i32) {
    %c0_i32 = arith.constant 0 : i32
    %c0_i32_0 = arith.constant 0 : i32
    %c0_i32_1 = arith.constant 0 : i32
    return %arg0, %c0_i32, %c0_i32_0 : i32, i32, i32
  }
}

</mosaic_0001>

<bundles_post_ra>
// kernel: squeeze_excite_pallas.1
= control target key start
LH: loop header
LB: loop body
LE: loop exit
PB: predicated region body
PF: predicated region fallthrough
CT: control target
= control target key end

     0   :  { %v412_v27 = vmov 0.0|0.0   ;;  %vm413_vm0 = vmmov 0   ;;  %v414_v31 = vmov 0.0   ;;  %v87_v32 = vlaneseq  ;;  %s634_s0 = inlined_call_operand.vmem [shape: f32[2,32,256], index: 0, kind: input, shape index: {}]   ;;  %s635_s1 = inlined_call_operand.vmem [shape: f32[32,8], index: 1, kind: input, shape index: {}]   ;;  %s636_s3 = inlined_call_operand.vmem [shape: f32[8,32], index: 3, kind: input, shape index: {}]   ;;  %s637_s2 = inlined_call_operand.vmem [shape: f32[1,8], index: 2, kind: input, shape index: {}]   ;;  %s638_s4 = inlined_call_operand.vmem [shape: f32[1,32], index: 4, kind: input, shape index: {}]   ;;  %s639_s5 = inlined_call_operand.vmem [shape: f32[2,32,256], index: 5, kind: output, shape index: {}]  }
   0x1   :  { %v448_v0 = vld [vmem:[%s634_s0 + $0x40] sm:$0xff]  ;;  %v453_v1 = vld [vmem:[%s634_s0 + $0x48] sm:$0xff]  ;;  %v470_v5 = vld [vmem:[%s634_s0 + $0x50] sm:$0xff]  ;;  %399 = vmatprep.subr.bf16.mxu0 %v412_v27  ;;  %391 = vmatprep.mubr.msk.f32.mxu0 %vm413_vm0, %v414_v31  ;;  %vm98_vm1 = vcmask 130112   ;;  %vm105_vm2 = vcmask 195712   ;;  %vm112_vm3 = vcmask 261312  }
   0x2   :  { %v458_v2 = vld [vmem:[%s634_s0] sm:$0xff]  ;;  %v48_v3 = vadd.f32 %v453_v1, %v448_v0  ;;  %v465_v4 = vld [vmem:[%s634_s0 + $0x8] sm:$0xff]  ;;  %v475_v6 = vld [vmem:[%s634_s0 + $0x58] sm:$0xff]  ;;  %394 = vmatprep.subr.mxu1 %v414_v31  ;;  %396 = vmatprep.mubr.msk.f32.mxu1 %vm413_vm0, %v414_v31  ;;  %v88_v34 = vand.u32 127, %v87_v32  ;;  %v553_v39 = vshrl.u32 %v87_v32, 7  ;;  %vm133_vm4 = vcmask 1041409  }
   0x3   :  { %v36_v7 = vadd.f32 %v465_v4, %v458_v2  ;;  %v482_v8 = vld [vmem:[%s634_s0 + $0x10] sm:$0xff]  ;;  %v487_v9 = vld [vmem:[%s634_s0 + $0x18] sm:$0xff]  ;;  %v51_v10 = vadd.f32 %v475_v6, %v470_v5  ;;  %v496_v12 = vld [vmem:[%s634_s0 + $0x60] sm:$0xff]  ;;  %vm135_vm5 = vcmask 261120   ;;  %vm217_vm6 = vcmask 64512  }
   0x4   :  { %49 = vadd.xlane.f32.xlu1 %v48_v3  ;;  %v39_v11 = vadd.f32 %v487_v9, %v482_v8  ;;  %v501_v13 = vld [vmem:[%s634_s0 + $0x68] sm:$0xff]  ;;  %v506_v14 = vld [vmem:[%s634_s0 + $0x20] sm:$0xff]  ;;  %v520_v18 = vld [vmem:[%s634_s0 + $0x70] sm:$0xff]  ;;  %v93_v36 = vadd.s32 4294967288, %v88_v34  ;;  %v100_v38 = vadd.s32 4294967280, %v88_v34  ;;  %v107_v43 = vadd.s32 4294967272, %v88_v34 }
   0x5   :  { %37 = vadd.xlane.f32.xlu0 %v36_v7  ;;  %v511_v15 = vld [vmem:[%s634_s0 + $0x28] sm:$0xff]  ;;  %v54_v16 = vadd.f32 %v501_v13, %v496_v12  ;;  %v525_v19 = vld [vmem:[%s634_s0 + $0x78] sm:$0xff]  ;;  %v530_v20 = vld [vmem:[%s634_s0 + $0x30] sm:$0xff]  ;;  %v91_v47 = vsub.s32 %v88_v34, %v553_v39 }
   0x6   :  { %v42_v17 = vadd.f32 %v511_v15, %v506_v14  ;;  %v535_v21 = vld [vmem:[%s634_s0 + $0x38] sm:$0xff]  ;;  %v57_v22 = vadd.f32 %v525_v19, %v520_v18  ;;  %v68_v24 = vld [vmem:[%s635_s1] sm:$0xff]  ;;  %v69_v25 = vld [vmem:[%s635_s1 + $0x8] sm:$0xff]  ;;  %v96_v41 = vsub.s32 %v93_v36, %v553_v39  ;;  %v103_v45 = vsub.s32 %v100_v38, %v553_v39 }
   0x7   :  { %v45_v23 = vadd.f32 %v535_v21, %v530_v20  ;;  %v400_v26 = vpack.c.bf16 %v69_v25, %v68_v24  ;;  %v70_v28 = vld [vmem:[%s635_s1 + $0x10] sm:$0xff]  ;;  %v71_v29 = vld [vmem:[%s635_s1 + $0x18] sm:$0xff]  ;;  %v110_v54 = vsub.s32 %v107_v43, %v553_v39  ;;  %v209_v25 = vld [vmem:[%s636_s3] sm:$0xff]  ;;  %v299_v38 = vsub.s32 0, %v553_v39 }
   0x8   :  { %52 = vadd.xlane.f32.xlu1 %v51_v10  ;;  %v403_v30 = vpack.c.bf16 %v71_v29, %v70_v28  ;;  %395 = vmatpush3.msra.mxu1 %v209_v25  ;;  %v373_v31 = vld [vmem:[%s638_s4] ss:$0 sm:$0xff] }
   0x9   :  { %40 = vadd.xlane.f32.xlu0 %v39_v11  ;;  %401 = vmatpush3.bf16.msra.mxu0 %v400_v26  ;;  %v371_v26 = vld [vmem:[%s637_s2] ss:$0 sm:$0xff] }
   0xa   :  { %402 = vmatprep.subr.bf16.mxu0 %v412_v27 }
   0xc   :  { %55 = vadd.xlane.f32.xlu1 %v54_v16 }
   0xd   :  { %43 = vadd.xlane.f32.xlu0 %v42_v17  ;;  %404 = vmatpush3.bf16.msra.mxu0 %v403_v30 }
  0x10   :  { %58 = vadd.xlane.f32.xlu1 %v57_v22 }
  0x11   :  { %46 = vadd.xlane.f32.xlu0 %v45_v23 }
  0x91   :  { %v50_v33 = vpop.xlane.xlu1 %49 }
  0x92   :  { %v38_v35 = vpop.xlane.xlu0 %37  ;;  %v64_v48 = vmul.f32 0.00390625, %v50_v33 }
  0x93   :  { %v60_v51 = vmul.f32 0.00390625, %v38_v35 }
  0x94   :  { %v117_v58 = vrot.slane %v64_v48, %v91_v47 }
  0x95   :  { %v53_v37 = vpop.xlane.xlu1 %52  ;;  %v92_v62 = vrot.slane %v60_v51, %v91_v47 }
  0x96   :  { %v41_v40 = vpop.xlane.xlu0 %40  ;;  %v65_v42 = vmul.f32 0.00390625, %v53_v37 }
  0x97   :  { %v61_v44 = vmul.f32 0.00390625, %v41_v40 }
  0x98   :  { %v121_v53 = vrot.slane %v65_v42, %v96_v41  ;;  %v318_v42 = vsub.s32 1, %v553_v39 }
  0x99   :  { %v56_v46 = vpop.xlane.xlu1 %55  ;;  %v97_v55 = vrot.slane %v61_v44, %v96_v41 }
  0x9a   :  { %v66_v49 = vmul.f32 0.00390625, %v56_v46  ;;  %v44_v50 = vpop.xlane.xlu0 %43  ;;  %v122_v3 = vsel %vm98_vm1, %v121_v53, %v117_v58 }
  0x9b   :  { %v62_v52 = vmul.f32 0.00390625, %v44_v50  ;;  %v99_v10 = vsel %vm98_vm1, %v97_v55, %v92_v62 }
  0x9c   :  { %v126_v56 = vrot.slane %v66_v49, %v103_v45 }
  0x9d   :  { %v59_v57 = vpop.xlane.xlu1 %58  ;;  %v104_v59 = vrot.slane %v62_v52, %v103_v45 }
  0x9e   :  { %v67_v60 = vmul.f32 0.00390625, %v59_v57  ;;  %v47_v61 = vpop.xlane.xlu0 %46  ;;  %v127_v11 = vsel %vm105_vm2, %v126_v56, %v122_v3 }
  0x9f   :  { %v63_v63 = vmul.f32 0.00390625, %v47_v61  ;;  %v106_v17 = vsel %vm105_vm2, %v104_v59, %v99_v10 }
  0xa0   :  { %v131_v7 = vrot.slane %v67_v60, %v110_v54 }
  0xa1   :  { %v111_v16 = vrot.slane %v63_v63, %v110_v54 }
  0xa2   :  { %v132_v22 = vsel %vm112_vm3, %v131_v7, %v127_v11 }
  0xa3   :  { %v113_v23 = vsel %vm112_vm3, %v111_v16, %v106_v17 }
  0xa4   :  { %v134_v24 = vsel %vm133_vm4, %v132_v22, %v113_v23 }
  0xa5   :  { %392 = vmatmul.mubr.msk.f32.vlgmr.msra.gmra.mrb[0].mxu0 %vm135_vm5, %v134_v24 }
 0x178   :  { %v204_v27 = vpop.f32.mrb[0].mxu0 }
 0x179   :  { %v205_v28 = vadd.f32 %v371_v26, %v204_v27  ;;  %v393_v29 = vpop.f32.mrb[1].mxu0 }
 0x17b   :  { %v208_v30 = vmax.f32 %v205_v28, 0.0 }
 0x17d   :  { %397 = vmatmul.mubr.msk.f32.vlgmr.msra.gmra.mrb[0].mxu1 %vm217_vm6, %v208_v30 }
 0x250   :  { %v287_v32 = vpop.f32.mrb[0].mxu1 }
 0x251   :  { %v288_v33 = vadd.f32 %v373_v31, %v287_v32  ;;  %v398_v34 = vpop.f32.mrb[1].mxu1 }
 0x253   :  { %v375_v35 = vmul.f32 -1.442695, %v288_v33 }
 0x255   :  { %408 = vpow2.f32 %v375_v35 }
 0x25f   :  { %v409_v36 = vpop.eup %408 }
 0x260   :  { %v294_v37 = vadd.f32 1.0, %v409_v36 }
 0x262   :  { %410 = vrcp.f32 %v294_v37 }
 0x26c   :  { %v411_v40 = vpop.eup %410 }
 0x26d   :  { %v300_v41 = vrot.slane %v411_v40, %v299_v38  ;;  %v319_v43 = vrot.slane %v411_v40, %v318_v42 }
 0x26f   :  { %306 = vbcast.lane.b32.xlu1 %v300_v41, 264  ;;  %302 = vbcast.lane.b32.xlu0 %v300_v41, 256 }
 0x273   :  { %310 = vbcast.lane.b32.xlu1 %v300_v41, 272  ;;  %321 = vbcast.lane.b32.xlu0 %v319_v43, 256 }
 0x277   :  { %314 = vbcast.lane.b32.xlu1 %v300_v41, 280  ;;  %329 = vbcast.lane.b32.xlu0 %v319_v43, 272 }
 0x27b   :  { %325 = vbcast.lane.b32.xlu1 %v319_v43, 264 }
 0x27f   :  { %333 = vbcast.lane.b32.xlu1 %v319_v43, 280 }
 0x2e1   :  { %v307_v44 = vpop.permute.xlu1 %306  ;;  %v303_v45 = vpop.permute.xlu0 %302 }
 0x2e2   :  { %v337_v46 = vmul.f32 %v307_v44, %v482_v8  ;;  %v338_v47 = vmul.f32 %v307_v44, %v487_v9  ;;  %v335_v48 = vmul.f32 %v303_v45, %v458_v2  ;;  %v336_v49 = vmul.f32 %v303_v45, %v465_v4 }
 0x2e4   :  { %353 = vst [vmem:[%s639_s5 + $0x10] sm:$0xff] %v337_v46  ;;  %354 = vst [vmem:[%s639_s5 + $0x18] sm:$0xff] %v338_v47 }
 0x2e5   :  { %351 = vst [vmem:[%s639_s5] sm:$0xff] %v335_v48  ;;  %352 = vst [vmem:[%s639_s5 + $0x8] sm:$0xff] %v336_v49  ;;  %v311_v8 = vpop.permute.xlu1 %310  ;;  %v322_v2 = vpop.permute.xlu0 %321 }
 0x2e6   :  { %v339_v4 = vmul.f32 %v311_v8, %v506_v14  ;;  %v340_v9 = vmul.f32 %v311_v8, %v511_v15  ;;  %v343_v39 = vmul.f32 %v322_v2, %v448_v0  ;;  %v344_v50 = vmul.f32 %v322_v2, %v453_v1 }
 0x2e8   :  { %355 = vst [vmem:[%s639_s5 + $0x20] sm:$0xff] %v339_v4  ;;  %356 = vst [vmem:[%s639_s5 + $0x28] sm:$0xff] %v340_v9 }
 0x2e9   :  { %359 = vst [vmem:[%s639_s5 + $0x40] sm:$0xff] %v343_v39  ;;  %360 = vst [vmem:[%s639_s5 + $0x48] sm:$0xff] %v344_v50  ;;  %v315_v14 = vpop.permute.xlu1 %314  ;;  %v330_v0 = vpop.permute.xlu0 %329 }
 0x2ea   :  { %v341_v1 = vmul.f32 %v315_v14, %v530_v20  ;;  %v342_v15 = vmul.f32 %v315_v14, %v535_v21  ;;  %v347_v51 = vmul.f32 %v330_v0, %v496_v12  ;;  %v348_v52 = vmul.f32 %v330_v0, %v501_v13 }
 0x2ec   :  { %357 = vst [vmem:[%s639_s5 + $0x30] sm:$0xff] %v341_v1  ;;  %358 = vst [vmem:[%s639_s5 + $0x38] sm:$0xff] %v342_v15 }
 0x2ed   :  { %363 = vst [vmem:[%s639_s5 + $0x60] sm:$0xff] %v347_v51  ;;  %364 = vst [vmem:[%s639_s5 + $0x68] sm:$0xff] %v348_v52  ;;  %v326_v20 = vpop.permute.xlu1 %325 }
 0x2ee   :  { %v345_v12 = vmul.f32 %v326_v20, %v470_v5  ;;  %v346_v13 = vmul.f32 %v326_v20, %v475_v6 }
 0x2f0   :  { %361 = vst [vmem:[%s639_s5 + $0x50] sm:$0xff] %v345_v12  ;;  %362 = vst [vmem:[%s639_s5 + $0x58] sm:$0xff] %v346_v13 }
 0x2f1   :  { %v334_v21 = vpop.permute.xlu1 %333 }
 0x2f2   :  { %v349_v53 = vmul.f32 %v334_v21, %v520_v18  ;;  %v350_v54 = vmul.f32 %v334_v21, %v525_v19 }
 0x2f4   :  { %365 = vst [vmem:[%s639_s5 + $0x70] sm:$0xff] %v349_v53  ;;  %366 = vst [vmem:[%s639_s5 + $0x78] sm:$0xff] %v350_v54 }

</bundles_post_ra>
